<compile_context>
chip_gen: v6e
topology: v6e:2x2x1
jax: 0.10.0
libtpu: 0.0.40
codegen_flags: <defaults>
</compile_context>

<pallas_src>
import jax
import jax.numpy as jnp
from jax.experimental import pallas as pl
from jax.experimental.pallas import tpu as pltpu


def _round_up(x, m):
    return (x + m - 1) // m * m


# --------------------------------------------------------------------------
# Path A: VMEM-resident table + one-hot MXU gather (small vocabularies).
# --------------------------------------------------------------------------
def _resident_kernel(idx_ref, table_ref, out_ref):
    # idx_ref:   (TM, 1)    int32 -- class indices for this tile.
    # table_ref: (C_pad, D) float -- VMEM-resident, lane-dense embedding table.
    # out_ref:   (TM, D)    float -- L2-normalized embedding rows.
    idx = idx_ref[...]                                        # (TM, 1)
    tm = idx.shape[0]
    c_pad = table_ref.shape[0]

    # Gather via one-hot matmul on the MXU (exact: each product is 0 or the
    # row value itself, so the selection introduces no rounding).  C_pad is a
    # multiple of 128, so the one-hot is lane-dense and the MXU contraction
    # depth is fully used.
    classes = jax.lax.broadcasted_iota(jnp.int32, (tm, c_pad), 1)
    onehot = (classes == idx).astype(table_ref.dtype)         # (TM, C_pad)
    rows = jnp.dot(onehot, table_ref[...],
                   preferred_element_type=jnp.float32)        # (TM, D) f32

    # L2 normalize: batched lane-reduce (XLU), rsqrt (EUP), scale (VPU).
    sq_sum = jnp.sum(rows * rows, axis=-1, keepdims=True)     # (TM, 1)
    out_ref[...] = (rows * jax.lax.rsqrt(sq_sum)).astype(out_ref.dtype)


# --------------------------------------------------------------------------
# Path B: HBM-resident table + scalar-prefetched DMA row gather (large vocab).
# --------------------------------------------------------------------------
def _gather_kernel(idx_ref, table_ref, out_ref, rows_ref, sem):
    # idx_ref:   (N_pad,) int32 -- SMEM, scalar-prefetched flat indices.
    # table_ref: (C, D)         -- HBM-resident embedding table (pl.ANY).
    # out_ref:   (TM, D)        -- VMEM output tile.
    # rows_ref:  (TM, D)        -- VMEM gather scratch (same dtype as table).
    # sem:       scalar DMA semaphore shared by all row copies (same size).
    i = pl.program_id(0)
    tm, _ = rows_ref.shape
    depth = min(16, tm)          # cap on outstanding row DMAs

    def start(r):
        row = idx_ref[i * tm + r]
        pltpu.make_async_copy(table_ref.at[row], rows_ref.at[r], sem).start()

    def wait(r):
        # All copies have identical shape, so waits are interchangeable; this
        # only throttles issuance and guarantees all TM rows have landed by
        # the end of the loop.
        pltpu.make_async_copy(table_ref.at[0], rows_ref.at[r], sem).wait()

    @pl.loop(0, depth)
    def _(r):
        start(r)

    @pl.loop(0, tm)
    def _(r):
        wait(r)

        @pl.when(r + depth < tm)
        def _():
            start(r + depth)

    rows = rows_ref[...].astype(jnp.float32)                  # (TM, D) f32
    sq_sum = jnp.sum(rows * rows, axis=-1, keepdims=True)     # (TM, 1)
    out_ref[...] = (rows * jax.lax.rsqrt(sq_sum)).astype(out_ref.dtype)


# --------------------------------------------------------------------------
# Wrapper.
# --------------------------------------------------------------------------
def text_encoder_forward(indices, emb_table, *, tm=1024, force_gather=False):
    """CLIP TextEncoder forward: L2-normalized embedding lookup.

    indices:   integer array (any shape)
    emb_table: (num_classes, D) float table, D a multiple of 128
    returns:   indices.shape + (D,), dtype of emb_table
    """
    orig_shape = indices.shape
    flat_idx = jnp.reshape(indices, (-1,)).astype(jnp.int32)
    n = int(flat_idx.shape[0])
    num_classes, d = emb_table.shape
    itemsize = jnp.dtype(emb_table.dtype).itemsize

    # Tile size: large tiles amortize per-grid-step overhead and keep the
    # output stores lane/sublane-dense, but keep >= 2 grid steps for mid-size
    # N so both v7x TensorCores get work.
    tm = min(tm, max(8, _round_up((n + 1) // 2, 8)))
    n_pad = _round_up(n, tm)

    # ---- residency decision (generation-aware guard) ----
    c_pad = max(128, _round_up(num_classes, 128))
    table_bytes = c_pad * d * itemsize
    resident_vmem = (
        table_bytes                  # resident table
        + tm * c_pad * 4             # iota (int32)
        + tm * c_pad * itemsize      # one-hot
        + tm * d * 4                 # f32 gathered rows
        + 2 * tm * d * itemsize      # double-buffered output tile
        + 2 * tm * 4                 # double-buffered index tile
    )
    resident_budget = int(1.3 * resident_vmem)                # 30% headroom
    # v7x has 64 MiB VMEM per TensorCore and each core holds its own copy of
    # the resident working set under "parallel" semantics -> cap at ~40 MiB.
    use_resident = (not force_gather) and resident_budget <= (40 << 20)

    if use_resident:
        idx_padded = jnp.zeros((n_pad, 1), jnp.int32).at[:n, 0].set(flat_idx)
        table = emb_table
        if c_pad != num_classes:
            table = (jnp.zeros((c_pad, d), emb_table.dtype)
                     .at[:num_classes].set(emb_table))

        cost = pl.CostEstimate(
            flops=2 * n_pad * c_pad * d + 3 * n_pad * d,
            transcendentals=n_pad,
            bytes_accessed=table_bytes + n_pad * 4 + n_pad * d * itemsize,
        )

        out = pl.pallas_call(
            _resident_kernel,
            out_shape=jax.ShapeDtypeStruct((n_pad, d), emb_table.dtype),
            grid_spec=pl.GridSpec(
                grid=(n_pad // tm,),
                in_specs=[
                    # NOTE: (TM, 1) index block is a tiny masked load; kept as
                    # is per review ("low priority") to avoid an in-kernel
                    # lane->sublane relayout of the indices.
                    pl.BlockSpec((tm, 1), lambda i: (i, 0)),
                    pl.BlockSpec((c_pad, d), lambda i: (0, 0)),  # resident
                ],
                out_specs=pl.BlockSpec((tm, d), lambda i: (i, 0)),
            ),
            compiler_params=pltpu.CompilerParams(
                dimension_semantics=("parallel",),
                # Never below the 32 MiB v6e/v7x default; raise with headroom
                # only when the resident working set needs it.
                vmem_limit_bytes=int(max(32 << 20, resident_budget)),
            ),
            cost_estimate=cost,
        )(idx_padded, table)
    else:
        idx_padded = jnp.zeros((n_pad,), jnp.int32).at[:n].set(flat_idx)

        cost = pl.CostEstimate(
            flops=3 * n_pad * d,
            transcendentals=n_pad,
            bytes_accessed=2 * n_pad * d * itemsize + n_pad * 4,
        )

        out = pl.pallas_call(
            _gather_kernel,
            out_shape=jax.ShapeDtypeStruct((n_pad, d), emb_table.dtype),
            grid_spec=pltpu.PrefetchScalarGridSpec(
                num_scalar_prefetch=1,
                grid=(n_pad // tm,),
                in_specs=[pl.BlockSpec(memory_space=pl.ANY)],   # table in HBM
                out_specs=pl.BlockSpec((tm, d), lambda i, idx: (i, 0)),
                scratch_shapes=[
                    pltpu.VMEM((tm, d), emb_table.dtype),
                    pltpu.SemaphoreType.DMA(()),
                ],
            ),
            compiler_params=pltpu.CompilerParams(
                dimension_semantics=("arbitrary",),
            ),
            cost_estimate=cost,
        )(idx_padded, emb_table)

    return jnp.reshape(out[:n], orig_shape + (d,))


if __name__ == "__main__":
    # Module-consistent small shapes (embedding_dim matches the nn.Module default).
    num_classes = 10
    embedding_dim = 512
    batch = 8

    key = jax.random.PRNGKey(0)
    k_emb, k_idx = jax.random.split(key)

    # Deterministic parameter init (nn.Embedding default: standard normal).
    emb_table = jax.random.normal(
        k_emb, (num_classes, embedding_dim), dtype=jnp.float32)

    # Example input: integer class labels.
    x = jax.random.randint(k_idx, (batch,), 0, num_classes, dtype=jnp.int32)

    # Reference in plain JAX.
    ref = emb_table[x]
    ref = ref / jnp.linalg.norm(ref, axis=-1, keepdims=True)

    # Fast path: VMEM-resident table + one-hot MXU gather.
    out = jax.block_until_ready(text_encoder_forward(x, emb_table))
    assert out.shape == (batch, embedding_dim)
    assert jnp.allclose(out, ref, atol=1e-5, rtol=1e-5), float(
        jnp.max(jnp.abs(out - ref)))

    # Large-vocab path: HBM table + scalar-prefetched DMA row gather
    # (forced here on small shapes so it is exercised and checked too).
    out2 = jax.block_until_ready(
        text_encoder_forward(x, emb_table, force_gather=True))
    assert jnp.allclose(out2, ref, atol=1e-5, rtol=1e-5), float(
        jnp.max(jnp.abs(out2 - ref)))

    print("KERNEL_OK")
</pallas_src>

<mosaic_0001>
module attributes {stable_mosaic.version = 11 : i64} {
  func.func @_resident_kernel(%arg0: i32, %arg1: memref<8x1xi32, #tpu.memory_space<vmem>>, %arg2: memref<128x512xf32, #tpu.memory_space<vmem>>, %arg3: memref<8x512xf32, #tpu.memory_space<vmem>>) attributes {dimension_semantics = [#tpu.dimension_semantics<parallel>], iteration_bounds = array<i64: 1>, scalar_prefetch = 0 : i64, scratch_operands = 0 : i64, tpu.core_type = #tpu.core_type<tc>, window_params = [{transform_indices = @transform_0, window_bounds = array<i64: 8, 1>}, {pipeline_mode = #tpu.pipeline_mode<synchronous>, transform_indices = @transform_1, window_bounds = array<i64: 128, 512>}, {transform_indices = @transform_2, window_bounds = array<i64: 8, 512>}]} {
    %c0 = arith.constant 0 : index
    %c0_0 = arith.constant 0 : index
    %0 = vector.load %arg1[%c0, %c0_0] : memref<8x1xi32, #tpu.memory_space<vmem>>, vector<8x1xi32>
    %1 = tpu.iota {dimensions = array<i32: 1>} : vector<8x128xi32>
    %2 = vector.broadcast %0 : vector<8x1xi32> to vector<8x128xi32>
    %3 = arith.cmpi eq, %1, %2 : vector<8x128xi32>
    %4 = arith.extui %3 : vector<8x128xi1> to vector<8x128xi32>
    %5 = arith.sitofp %4 : vector<8x128xi32> to vector<8x128xf32>
    %c0_1 = arith.constant 0 : index
    %c0_2 = arith.constant 0 : index
    %6 = vector.load %arg2[%c0_1, %c0_2] : memref<128x512xf32, #tpu.memory_space<vmem>>, vector<128x512xf32>
    %cst = arith.constant dense<0.000000e+00> : vector<8x512xf32>
    %7 = tpu.matmul %5, %6, %cst {dimension_numbers = #tpu.dot_dimension_numbers<[1], [0], [0], [1], [0, 0, 1, 1], [], []>} : vector<8x128xf32>, vector<128x512xf32>, vector<8x512xf32> -> vector<8x512xf32>
    %8 = arith.mulf %7, %7 : vector<8x512xf32>
    %cst_3 = arith.constant dense<0.000000e+00> : vector<8xf32>
    %9 = vector.multi_reduction <add>, %8, %cst_3 [1] : vector<8x512xf32> to vector<8xf32>
    %10 = vector.shape_cast %9 : vector<8xf32> to vector<8x1xf32>
    %11 = math.rsqrt %10 : vector<8x1xf32>
    %12 = vector.broadcast %11 : vector<8x1xf32> to vector<8x512xf32>
    %13 = arith.mulf %7, %12 : vector<8x512xf32>
    %c0_4 = arith.constant 0 : index
    %c0_5 = arith.constant 0 : index
    %14 = vector.load %arg3[%c0_4, %c0_5] : memref<8x512xf32, #tpu.memory_space<vmem>>, vector<8x512xf32>
    tpu.vector_store %arg3[%c0_4, %c0_5], %13 {strides = array<i32>} : memref<8x512xf32, #tpu.memory_space<vmem>>, vector<8x512xf32>,
    return
  }
  func.func @transform_0(%arg0: i32) -> (i32, i32) {
    %c0_i32 = arith.constant 0 : i32
    %c0_i32_0 = arith.constant 0 : i32
    return %arg0, %c0_i32 : i32, i32
  }
  func.func @transform_1(%arg0: i32) -> (i32, i32) {
    %c0_i32 = arith.constant 0 : i32
    %c0_i32_0 = arith.constant 0 : i32
    %c0_i32_1 = arith.constant 0 : i32
    return %c0_i32, %c0_i32_0 : i32, i32
  }
  func.func @transform_2(%arg0: i32) -> (i32, i32) {
    %c0_i32 = arith.constant 0 : i32
    %c0_i32_0 = arith.constant 0 : i32
    return %arg0, %c0_i32 : i32, i32
  }
}

</mosaic_0001>

<bundles_post_ra>
// kernel: tpu_custom_call.1
= control target key start
LH: loop header
LB: loop body
LE: loop exit
PB: predicated region body
PF: predicated region fallthrough
CT: control target
= control target key end

     0   :  { %7 = vsyncpa [#allocation3], 0  ;;  %s362_s0 = inlined_call_operand.vmem [shape: s32[8,1], index: 0, kind: input, shape index: {}]   ;;  %s363_s1 = inlined_call_operand.hbm [shape: f32[128,512], index: 1, kind: input, shape index: {}]   ;;  %s364_s2 = inlined_call_operand.hbm [shape: f32[8,512], index: 2, kind: output, shape index: {}]  }
   0x1   :  { %8 = vsyncpa [#allocation4], 0  ;;  %s331_s9 = smov [#allocation2]  }
   0x2   :  { %s16_s10 = sshll.u32 %s331_s9, 4  ;;  %s17_s10 = int_to_ptr.vmem [resolvable:$true] %s16_s10 }
   0x3   :  { %s295_s11 = scalar_lea.vmem %s17_s10, 8192  ;;  %p300_p1 = scmp.lt.s32.totalorder %s17_s10, %s17_s10 }
   0x4   :  { %p296_p0 = scmp.ne.s32.totalorder %s17_s10, %s295_s11  ;;  %p301_p2 = scmp.lt.s32.totalorder %s295_s11, %s295_s11 }
   0x6   :  { %p302_p3 = por %p301_p2, %p300_p1 }
   0x8   :  { %p303_p4 = pnand %p302_p3, %p296_p0 }
   0xa   :  { %306 = shalt.err (!%p303_p4)
}
   0xb   :  { %s332_s12 = smov 512   ;;  %s333_s13 = smov 32  }
   0xc   :  { %22 = dma.hbm_to_vmem [thread:$0]  %s363_s1, 8192, %s17_s10, [#allocation3], %s332_s12, %s332_s12, %s333_s13  }
   0xd   :  { %327 = dma.done.wait [#allocation3], 8192  }
   0xe   :  { %328 = vsyncadd [#allocation3], 4294959104  ;;  %v334_v0 = vmov 0   ;;  %v335_v1 = vmov 0.0   ;;  %v26_v2 = vld [vmem:[%s362_s0] sm:$0xff]  ;;  %v96_v3 = vld [vmem:[#allocation2 + $0x1e8] sm:$0xff] }
   0xf   :  { %284 = vset.pattern.permute.xlu0 %v334_v0  ;;  %163 = vmatprep.mubr.f32.mxu0 %v335_v1  ;;  %v98_v4 = vld [vmem:[#allocation2 + $0x1f8] sm:$0xff]  ;;  %v95_v5 = vld [vmem:[#allocation2 + $0x1e0] sm:$0xff]  ;;  %v97_v6 = vld [vmem:[#allocation2 + $0x1f0] sm:$0xff]  ;;  %s337_s0 = smov [#allocation5]  }
  0x10   :  { %234 = vmatprep.mubr.f32.mxu1 %v335_v1  ;;  %30 = vperm.xlu0 %284, %v26_v2   ;;  %v92_v7 = vld [vmem:[#allocation2 + $0x1c8] sm:$0xff]  ;;  %v94_v8 = vld [vmem:[#allocation2 + $0x1d8] sm:$0xff]  ;;  %v91_v9 = vld [vmem:[#allocation2 + $0x1c0] sm:$0xff]  ;;  %s265_s1 = sshll.u32 %s337_s0, 4  ;;  %s266_s1 = int_to_ptr.vmem [resolvable:$true] %s265_s1 }
  0x11   :  { %99 = vmatprep.subr.mxu0 %v96_v3  ;;  %170 = vmatprep.subr.mxu1 %v98_v4  ;;  %v93_v10 = vld [vmem:[#allocation2 + $0x1d0] sm:$0xff]  ;;  %v88_v11 = vld [vmem:[#allocation2 + $0x1a8] sm:$0xff]  ;;  %v90_v12 = vld [vmem:[#allocation2 + $0x1b8] sm:$0xff]  ;;  %v27_v3 = vlaneseq  ;;  %s307_s18 = scalar_lea.vmem %s266_s1, 512  ;;  %p312_p6 = scmp.lt.s32.totalorder %s266_s1, %s266_s1 }
  0x12   :  { %100 = vmatpush1.msra.mxu0 %v95_v5  ;;  %171 = vmatpush1.msra.mxu1 %v97_v6  ;;  %v87_v13 = vld [vmem:[#allocation2 + $0x1a0] sm:$0xff]  ;;  %v89_v14 = vld [vmem:[#allocation2 + $0x1b0] sm:$0xff]  ;;  %v84_v15 = vld [vmem:[#allocation2 + $0x188] sm:$0xff]  ;;  %v336_v6 = vmov 1.0   ;;  %p308_p5 = scmp.ne.s32.totalorder %s266_s1, %s307_s18  ;;  %p313_p7 = scmp.lt.s32.totalorder %s307_s18, %s307_s18 }
  0x13   :  { %101 = vmatprep.subr.mxu0 %v92_v7  ;;  %172 = vmatprep.subr.mxu1 %v94_v8  ;;  %v86_v16 = vld [vmem:[#allocation2 + $0x198] sm:$0xff]  ;;  %v83_v17 = vld [vmem:[#allocation2 + $0x180] sm:$0xff]  ;;  %v85_v18 = vld [vmem:[#allocation2 + $0x190] sm:$0xff]  ;;  %v28_v4 = vand.u32 127, %v27_v3 }
  0x14   :  { %102 = vmatpush1.msra.mxu0 %v91_v9  ;;  %173 = vmatpush1.msra.mxu1 %v93_v10  ;;  %v80_v19 = vld [vmem:[#allocation2 + $0x168] sm:$0xff]  ;;  %v82_v20 = vld [vmem:[#allocation2 + $0x178] sm:$0xff]  ;;  %v79_v21 = vld [vmem:[#allocation2 + $0x160] sm:$0xff]  ;;  %p314_p8 = por %p313_p7, %p312_p6 }
  0x15   :  { %103 = vmatprep.subr.mxu0 %v88_v11  ;;  %174 = vmatprep.subr.mxu1 %v90_v12  ;;  %v81_v22 = vld [vmem:[#allocation2 + $0x170] sm:$0xff]  ;;  %v76_v23 = vld [vmem:[#allocation2 + $0x148] sm:$0xff]  ;;  %v78_v24 = vld [vmem:[#allocation2 + $0x158] sm:$0xff] }
  0x16   :  { %104 = vmatpush1.msra.mxu0 %v87_v13  ;;  %175 = vmatpush1.msra.mxu1 %v89_v14  ;;  %v75_v25 = vld [vmem:[#allocation2 + $0x140] sm:$0xff]  ;;  %v77_v26 = vld [vmem:[#allocation2 + $0x150] sm:$0xff]  ;;  %v72_v27 = vld [vmem:[#allocation2 + $0x128] sm:$0xff]  ;;  %p315_p9 = pnand %p314_p8, %p308_p5 }
  0x17   :  { %105 = vmatprep.subr.mxu0 %v84_v15  ;;  %176 = vmatprep.subr.mxu1 %v86_v16  ;;  %v74_v28 = vld [vmem:[#allocation2 + $0x138] sm:$0xff]  ;;  %v71_v29 = vld [vmem:[#allocation2 + $0x120] sm:$0xff]  ;;  %v73_v30 = vld [vmem:[#allocation2 + $0x130] sm:$0xff] }
  0x18   :  { %106 = vmatpush1.msra.mxu0 %v83_v17  ;;  %177 = vmatpush1.msra.mxu1 %v85_v18  ;;  %v68_v31 = vld [vmem:[#allocation2 + $0x108] sm:$0xff]  ;;  %v70_v32 = vld [vmem:[#allocation2 + $0x118] sm:$0xff]  ;;  %v67_v33 = vld [vmem:[#allocation2 + $0x100] sm:$0xff] }
  0x19   :  { %107 = vmatprep.subr.mxu0 %v80_v19  ;;  %178 = vmatprep.subr.mxu1 %v82_v20  ;;  %v69_v34 = vld [vmem:[#allocation2 + $0x110] sm:$0xff]  ;;  %v64_v35 = vld [vmem:[#allocation2 + $0xe8] sm:$0xff]  ;;  %v66_v36 = vld [vmem:[#allocation2 + $0xf8] sm:$0xff] }
  0x1a   :  { %108 = vmatpush1.msra.mxu0 %v79_v21  ;;  %179 = vmatpush1.msra.mxu1 %v81_v22  ;;  %v63_v37 = vld [vmem:[#allocation2 + $0xe0] sm:$0xff]  ;;  %v65_v38 = vld [vmem:[#allocation2 + $0xf0] sm:$0xff]  ;;  %v60_v39 = vld [vmem:[#allocation2 + $0xc8] sm:$0xff] }
  0x1b   :  { %109 = vmatprep.subr.mxu0 %v76_v23  ;;  %180 = vmatprep.subr.mxu1 %v78_v24  ;;  %v62_v40 = vld [vmem:[#allocation2 + $0xd8] sm:$0xff]  ;;  %v59_v41 = vld [vmem:[#allocation2 + $0xc0] sm:$0xff]  ;;  %v61_v42 = vld [vmem:[#allocation2 + $0xd0] sm:$0xff] }
  0x1c   :  { %110 = vmatpush1.msra.mxu0 %v75_v25  ;;  %181 = vmatpush1.msra.mxu1 %v77_v26  ;;  %v56_v43 = vld [vmem:[#allocation2 + $0xa8] sm:$0xff]  ;;  %v58_v44 = vld [vmem:[#allocation2 + $0xb8] sm:$0xff]  ;;  %v55_v45 = vld [vmem:[#allocation2 + $0xa0] sm:$0xff] }
  0x1d   :  { %111 = vmatprep.subr.mxu0 %v72_v27  ;;  %182 = vmatprep.subr.mxu1 %v74_v28  ;;  %v57_v46 = vld [vmem:[#allocation2 + $0xb0] sm:$0xff]  ;;  %v52_v47 = vld [vmem:[#allocation2 + $0x88] sm:$0xff]  ;;  %v54_v48 = vld [vmem:[#allocation2 + $0x98] sm:$0xff] }
  0x1e   :  { %112 = vmatpush1.msra.mxu0 %v71_v29  ;;  %183 = vmatpush1.msra.mxu1 %v73_v30  ;;  %v51_v49 = vld [vmem:[#allocation2 + $0x80] sm:$0xff]  ;;  %v53_v50 = vld [vmem:[#allocation2 + $0x90] sm:$0xff]  ;;  %v48_v51 = vld [vmem:[#allocation2 + $0x68] sm:$0xff] }
  0x1f   :  { %113 = vmatprep.subr.mxu0 %v68_v31  ;;  %184 = vmatprep.subr.mxu1 %v70_v32  ;;  %v50_v52 = vld [vmem:[#allocation2 + $0x78] sm:$0xff]  ;;  %v47_v53 = vld [vmem:[#allocation2 + $0x60] sm:$0xff]  ;;  %v49_v54 = vld [vmem:[#allocation2 + $0x70] sm:$0xff] }
  0x20   :  { %114 = vmatpush1.msra.mxu0 %v67_v33  ;;  %185 = vmatpush1.msra.mxu1 %v69_v34  ;;  %v44_v55 = vld [vmem:[#allocation2 + $0x48] sm:$0xff]  ;;  %v46_v56 = vld [vmem:[#allocation2 + $0x58] sm:$0xff]  ;;  %v43_v57 = vld [vmem:[#allocation2 + $0x40] sm:$0xff] }
  0x21   :  { %115 = vmatprep.subr.mxu0 %v64_v35  ;;  %186 = vmatprep.subr.mxu1 %v66_v36  ;;  %v45_v58 = vld [vmem:[#allocation2 + $0x50] sm:$0xff]  ;;  %v40_v59 = vld [vmem:[#allocation2 + $0x28] sm:$0xff]  ;;  %v42_v60 = vld [vmem:[#allocation2 + $0x38] sm:$0xff] }
  0x22   :  { %116 = vmatpush1.msra.mxu0 %v63_v37  ;;  %187 = vmatpush1.msra.mxu1 %v65_v38  ;;  %v39_v61 = vld [vmem:[#allocation2 + $0x20] sm:$0xff]  ;;  %v41_v62 = vld [vmem:[#allocation2 + $0x30] sm:$0xff]  ;;  %v36_v63 = vld [vmem:[#allocation2 + $0x8] sm:$0xff] }
  0x23   :  { %117 = vmatprep.subr.mxu0 %v60_v39  ;;  %188 = vmatprep.subr.mxu1 %v62_v40  ;;  %v38_v0 = vld [vmem:[#allocation2 + $0x18] sm:$0xff]  ;;  %v35_v1 = vld [vmem:[#allocation2] sm:$0xff]  ;;  %v37_v2 = vld [vmem:[#allocation2 + $0x10] sm:$0xff] }
  0x24   :  { %118 = vmatpush1.msra.mxu0 %v59_v41  ;;  %189 = vmatpush1.msra.mxu1 %v61_v42 }
  0x25   :  { %119 = vmatprep.subr.mxu0 %v56_v43  ;;  %190 = vmatprep.subr.mxu1 %v58_v44 }
  0x26   :  { %120 = vmatpush1.msra.mxu0 %v55_v45  ;;  %191 = vmatpush1.msra.mxu1 %v57_v46 }
  0x27   :  { %121 = vmatprep.subr.mxu0 %v52_v47  ;;  %192 = vmatprep.subr.mxu1 %v54_v48 }
  0x28   :  { %122 = vmatpush1.msra.mxu0 %v51_v49  ;;  %193 = vmatpush1.msra.mxu1 %v53_v50 }
  0x29   :  { %123 = vmatprep.subr.mxu0 %v48_v51  ;;  %194 = vmatprep.subr.mxu1 %v50_v52 }
  0x2a   :  { %124 = vmatpush1.msra.mxu0 %v47_v53  ;;  %195 = vmatpush1.msra.mxu1 %v49_v54 }
  0x2b   :  { %125 = vmatprep.subr.mxu0 %v44_v55  ;;  %196 = vmatprep.subr.mxu1 %v46_v56 }
  0x2c   :  { %126 = vmatpush1.msra.mxu0 %v43_v57  ;;  %197 = vmatpush1.msra.mxu1 %v45_v58 }
  0x2d   :  { %127 = vmatprep.subr.mxu0 %v40_v59  ;;  %198 = vmatprep.subr.mxu1 %v42_v60 }
  0x2e   :  { %128 = vmatpush1.msra.mxu0 %v39_v61  ;;  %199 = vmatpush1.msra.mxu1 %v41_v62 }
  0x2f   :  { %129 = vmatprep.subr.mxu0 %v36_v63  ;;  %200 = vmatprep.subr.mxu1 %v38_v0 }
  0x30   :  { %130 = vmatpush1.msra.mxu0 %v35_v1  ;;  %201 = vmatpush1.msra.mxu1 %v37_v2 }
  0x8b   :  { %v31_v5 = vpop.permute.xlu0 %30 }
  0x8c   :  { %vm32_vm0 = vcmp.eq.s32.totalorder %v28_v4, %v31_v5 }
  0x8d   :  { %275 = vmatmul.mubr.msk.f32.vlgmr.msra.gmra.mxu0 %vm32_vm0, %v336_v6  ;;  %276 = vmatmul.mubr.msk.f32.vlgmr.msra.gmra.mxu1 %vm32_vm0, %v336_v6 }
 0x14d   :  { %v165_v7 = vpop.f32.mrf.mxu0  ;;  %v236_v8 = vpop.f32.mrf.mxu1 }
 0x14e   :  { %v241_v10 = vmul.f32 %v165_v7, %v165_v7  ;;  %v243_v13 = vmul.f32 %v236_v8, %v236_v8 }
 0x14f   :  { %v167_v9 = vpop.f32.mrf.mxu0  ;;  %v238_v12 = vpop.f32.mrf.mxu1 }
 0x150   :  { %v242_v11 = vmul.f32 %v167_v9, %v167_v9  ;;  %v244_v15 = vmul.f32 %v238_v12, %v238_v12 }
 0x152   :  { %v245_v14 = vadd.f32 %v242_v11, %v241_v10 }
 0x154   :  { %v246_v16 = vadd.f32 %v245_v14, %v243_v13 }
 0x156   :  { %v247_v17 = vadd.f32 %v246_v16, %v244_v15 }
 0x158   :  { %248 = vadd.xlane.f32.xlu0 %v247_v17 }
 0x1e1   :  { %v249_v18 = vpop.xlane.xlu0 %248 }
 0x1e2   :  { %285 = vrsqrt.f32 %v249_v18 }
 0x1ef   :  { %v286_v19 = vpop.eup %285 }
 0x1f0   :  { %v251_v20 = vmul.f32 %v286_v19, %v165_v7  ;;  %v252_v21 = vmul.f32 %v286_v19, %v167_v9  ;;  %v253_v22 = vmul.f32 %v286_v19, %v236_v8  ;;  %v254_v23 = vmul.f32 %v286_v19, %v238_v12 }
 0x1f2   :  { %255 = vst [vmem:[#allocation5] sm:$0xff] %v251_v20  ;;  %256 = vst [vmem:[#allocation5 + $0x8] sm:$0xff] %v252_v21 }
 0x1f3   :  { %257 = vst [vmem:[#allocation5 + $0x10] sm:$0xff] %v253_v22  ;;  %258 = vst [vmem:[#allocation5 + $0x18] sm:$0xff] %v254_v23 }
 0x1f4   :  { %318 = shalt.err (!%p315_p9)
}
 0x1f5   :  { %268 = dma.vmem_to_hbm [thread:$0]  %s266_s1, 512, %s364_s2, [#allocation4]  }
 0x1f6   :  { %329 = dma.done.wait [#allocation4], 512  }
 0x1f7   :  { %330 = vsyncadd [#allocation4], 4294966784 }
 0x1f8   :  { %272 = vsyncpa [#allocation3], 1 }
 0x1f9   :  { %273 = vsyncpa [#allocation4], 1 }

</bundles_post_ra>
